<compile_context>
chip_gen: v7x
topology: tpu7x:2x2x1
jax: 0.10.0
libtpu: 0.0.40
codegen_flags: <defaults>
</compile_context>

<pallas_src>
import jax
import jax.numpy as jnp
from jax.experimental import pallas as pl
from jax.experimental.pallas import tpu as pltpu

EPS = 1e-5


# ----------------------------------------------------------------------------
# Sizing helpers
# ----------------------------------------------------------------------------
def _round_up(x, m):
    return ((x + m - 1) // m) * m


def _vmem_budgets():
    """Per-generation (vmem_limit_bytes, tile working-set budget).

    limit ~= 0.75 x physical VMEM, tile budget ~= limit / 3 (headroom for
    Mosaic internal scratch, param tiles, pipeline bookkeeping).
    Falls back to the smallest current generation (v7x: 64 MiB per TC).
    """
    phys = 64 * 1024 * 1024
    try:
        info = pltpu.get_tpu_info()
        cap = int(getattr(info, "vmem_capacity_bytes", phys))
        if cap > 0:
            phys = cap
    except Exception:
        pass
    limit = min(int(phys * 0.75), 100 * 1024 * 1024)
    return limit, limit // 3


def _bytes_per_col(rows, itemsize, num_inputs):
    """VMEM bytes consumed per lane (feature column) of one grid step.

    (num_inputs x-windows + 1 y-window), each double-buffered, at the I/O
    dtype, plus ~2 f32 tile copies of live in-kernel compute state (the f32
    upcast of the summed x and one temporary).
    """
    io = (num_inputs + 1) * 2 * rows * int(itemsize)
    compute = 2 * rows * 4
    return io + compute


def _choose_tile_c(n, c_pad, itemsize, num_inputs, tile_budget, max_tile_c=None):
    """Largest lane-dense tile width (multiple of 128 dividing c_pad) that fits.

    Returns None when even a 128-wide full-column slab exceeds the budget
    (caller falls back to the two-pass batch-tiled path).
    """
    bpc = _bytes_per_col(n, itemsize, num_inputs)
    cap = (tile_budget // bpc // 128) * 128
    if cap < 128:
        return None
    if max_tile_c is not None:
        cap = min(cap, max(128, (int(max_tile_c) // 128) * 128))
    # Guarantee >= 2 feature blocks when C allows, so v7x's two TensorCores
    # can split the "parallel" grid axis (harmless on single-TC v5e/v6e).
    if c_pad >= 256:
        cap = min(cap, (c_pad // 2 // 128) * 128)
    cap = min(cap, c_pad)
    tile = cap
    while c_pad % tile != 0:  # 128 divides c_pad, so this terminates at >=128
        tile -= 128
    return tile


def _choose_two_pass_tiles(n, c_pad, itemsize, num_inputs, tile_budget,
                           max_tile_n=None, max_tile_c=None):
    tile_n = min(512, _round_up(n, 8))
    if max_tile_n is not None:
        tile_n = min(tile_n, max(8, (int(max_tile_n) // 8) * 8))
    bpc = _bytes_per_col(tile_n, itemsize, num_inputs)
    cap = (tile_budget // bpc // 128) * 128
    cap = max(cap, 128)
    if max_tile_c is not None:
        cap = min(cap, max(128, (int(max_tile_c) // 128) * 128))
    cap = min(cap, c_pad)
    tile_c = cap
    while c_pad % tile_c != 0:
        tile_c -= 128
    return tile_n, tile_c


# ----------------------------------------------------------------------------
# Kernels
# ----------------------------------------------------------------------------
def _make_fused_kernel(num_inputs):
    """Single-pass kernel: fused list-sum + batch stats + normalize."""

    def kernel(*refs):
        x_refs = refs[:num_inputs]
        gamma_ref = refs[num_inputs]
        beta_ref = refs[num_inputs + 1]
        o_ref = refs[num_inputs + 2]

        # Fused list-sum (matches `X = sum(X)`), computed in f32.
        x = x_refs[0][...].astype(jnp.float32)          # (N, TILE_C)
        for r in x_refs[1:]:
            x = x + r[...].astype(jnp.float32)

        n = x.shape[0]
        inv_n = 1.0 / n
        col_sum = jnp.sum(x, axis=0, keepdims=True)          # (1, TILE_C)
        col_sumsq = jnp.sum(x * x, axis=0, keepdims=True)    # (1, TILE_C)
        mean = col_sum * inv_n
        var = jnp.maximum(col_sumsq * inv_n - mean * mean, 0.0)
        inv_std = jax.lax.rsqrt(var + EPS)                   # EUP slot
        scale = gamma_ref[...] * inv_std                     # (1, TILE_C)
        shift = beta_ref[...] - mean * scale                 # (1, TILE_C)
        o_ref[...] = (x * scale + shift).astype(o_ref.dtype)

    return kernel


def _make_stats_kernel(num_inputs):
    """Pass 1 of the large-N path: per-feature sum / sum-of-squares."""

    def kernel(*refs):
        x_refs = refs[:num_inputs]
        sum_ref = refs[num_inputs]
        sumsq_ref = refs[num_inputs + 1]

        @pl.when(pl.program_id(1) == 0)
        def _():
            sum_ref[...] = jnp.zeros_like(sum_ref)
            sumsq_ref[...] = jnp.zeros_like(sumsq_ref)

        x = x_refs[0][...].astype(jnp.float32)          # (TILE_N, TILE_C)
        for r in x_refs[1:]:
            x = x + r[...].astype(jnp.float32)
        sum_ref[...] += jnp.sum(x, axis=0, keepdims=True)
        sumsq_ref[...] += jnp.sum(x * x, axis=0, keepdims=True)

    return kernel


def _make_normalize_kernel(num_inputs):
    """Pass 2 of the large-N path: y = sum(x_i) * scale + shift."""

    def kernel(*refs):
        x_refs = refs[:num_inputs]
        scale_ref = refs[num_inputs]
        shift_ref = refs[num_inputs + 1]
        o_ref = refs[num_inputs + 2]

        x = x_refs[0][...].astype(jnp.float32)
        for r in x_refs[1:]:
            x = x + r[...].astype(jnp.float32)
        o_ref[...] = (x * scale_ref[...] + shift_ref[...]).astype(o_ref.dtype)

    return kernel


# ----------------------------------------------------------------------------
# Dispatch paths
# ----------------------------------------------------------------------------
def _batchnorm1d_fused(xs, gamma2d, beta2d, n, c_pad, out_dtype, tile_c,
                       vmem_limit):
    grid = (c_pad // tile_c,)
    x_spec = pl.BlockSpec((n, tile_c), lambda j: (0, j))
    param_spec = pl.BlockSpec((1, tile_c), lambda j: (0, j))
    return pl.pallas_call(
        _make_fused_kernel(len(xs)),
        out_shape=jax.ShapeDtypeStruct((n, c_pad), out_dtype),
        grid=grid,
        in_specs=[x_spec] * len(xs) + [param_spec, param_spec],
        out_specs=x_spec,
        compiler_params=pltpu.CompilerParams(
            dimension_semantics=("parallel",),
            vmem_limit_bytes=vmem_limit,
        ),
    )(*xs, gamma2d, beta2d)


def _batchnorm1d_two_pass(xs, gamma2d, beta2d, n, c_pad, out_dtype, itemsize,
                          tile_budget, vmem_limit, max_tile_n=None,
                          max_tile_c=None):
    num_inputs = len(xs)
    tile_n, tile_c = _choose_two_pass_tiles(
        n, c_pad, itemsize, num_inputs, tile_budget, max_tile_n, max_tile_c)
    n_pad = _round_up(n, tile_n)
    if n_pad != n:
        # Zero rows contribute nothing to sum / sumsq; true n is divided below.
        xs = [jnp.pad(xi, ((0, n_pad - n), (0, 0))) for xi in xs]

    c_blocks = c_pad // tile_c
    n_blocks = n_pad // tile_n
    x_spec = pl.BlockSpec((tile_n, tile_c), lambda jc, jn: (jn, jc))
    stat_spec = pl.BlockSpec((1, tile_c), lambda jc, jn: (0, jc))

    # Pass 1: per-feature sum / sumsq (batch axis is the reduction axis, last
    # in the grid, marked "arbitrary"; stats stay resident in VMEM across it).
    col_sum, col_sumsq = pl.pallas_call(
        _make_stats_kernel(num_inputs),
        out_shape=(jax.ShapeDtypeStruct((1, c_pad), jnp.float32),
                   jax.ShapeDtypeStruct((1, c_pad), jnp.float32)),
        grid=(c_blocks, n_blocks),
        in_specs=[x_spec] * num_inputs,
        out_specs=(stat_spec, stat_spec),
        compiler_params=pltpu.CompilerParams(
            dimension_semantics=("parallel", "arbitrary"),
            vmem_limit_bytes=vmem_limit,
        ),
    )(*xs)

    # Tiny (C,)-sized epilogue in plain JAX.
    inv_n = 1.0 / n
    mean = col_sum * inv_n
    var = jnp.maximum(col_sumsq * inv_n - mean * mean, 0.0)
    scale = gamma2d * jax.lax.rsqrt(var + EPS)
    shift = beta2d - mean * scale

    # Pass 2: normalize.
    out = pl.pallas_call(
        _make_normalize_kernel(num_inputs),
        out_shape=jax.ShapeDtypeStruct((n_pad, c_pad), out_dtype),
        grid=(c_blocks, n_blocks),
        in_specs=[x_spec] * num_inputs + [stat_spec, stat_spec],
        out_specs=x_spec,
        compiler_params=pltpu.CompilerParams(
            dimension_semantics=("parallel", "parallel"),
            vmem_limit_bytes=vmem_limit,
        ),
    )(*xs, scale, shift)

    if n_pad != n:
        out = out[:n]
    return out


def batchnorm1d(x, gamma, beta, *, max_tile_c=None, max_tile_n=None,
                force_two_pass=False):
    """BatchNorm1d forward (training-mode batch stats).

    Accepts a single (N, C) array or a list/tuple of them (summed inside the
    kernel, matching the PyTorch module's `if isinstance(X, list): X = sum(X)`).
    """
    xs = list(x) if isinstance(x, (list, tuple)) else [x]
    n, c = xs[0].shape
    out_dtype = jnp.result_type(*[xi.dtype for xi in xs])
    num_inputs = len(xs)

    vmem_limit, tile_budget = _vmem_budgets()

    # Lane-dense layout: pad the feature axis to a multiple of 128 so the
    # output store is full-width vst instead of masked partial stores.
    c_pad = _round_up(c, 128)
    if c_pad != c:
        pad = c_pad - c
        xs = [jnp.pad(xi, ((0, 0), (0, pad))) for xi in xs]
        gamma = jnp.pad(jnp.ravel(gamma), (0, pad))
        beta = jnp.pad(jnp.ravel(beta), (0, pad))
    gamma2d = jnp.reshape(gamma, (1, c_pad)).astype(jnp.float32)
    beta2d = jnp.reshape(beta, (1, c_pad)).astype(jnp.float32)

    itemsize = jnp.dtype(out_dtype).itemsize
    tile_c = None
    if not force_two_pass:
        tile_c = _choose_tile_c(n, c_pad, itemsize, num_inputs, tile_budget,
                                max_tile_c)

    if tile_c is not None:
        out = _batchnorm1d_fused(xs, gamma2d, beta2d, n, c_pad, out_dtype,
                                 tile_c, vmem_limit)
    else:
        out = _batchnorm1d_two_pass(xs, gamma2d, beta2d, n, c_pad, out_dtype,
                                    itemsize, tile_budget, vmem_limit,
                                    max_tile_n, max_tile_c)

    if c_pad != c:
        out = out[:, :c]
    return out


# ----------------------------------------------------------------------------
# Reference & tests
# ----------------------------------------------------------------------------
def _reference(x, gamma, beta):
    if isinstance(x, (list, tuple)):
        acc = x[0]
        for xi in x[1:]:
            acc = acc + xi
        x = acc
    mean = jnp.mean(x, axis=0, keepdims=True)
    var = jnp.mean((x - mean) ** 2, axis=0, keepdims=True)
    return (x - mean) / jnp.sqrt(var + EPS) * gamma + beta


if __name__ == "__main__":
    key = jax.random.PRNGKey(0)
    k1, k2, k3, k4 = jax.random.split(key, 4)

    # Case 1: small shape, C not a multiple of 128 -> padded to 128 lanes.
    batch, d_in = 8, 32
    x = jax.random.normal(k1, (batch, d_in), dtype=jnp.float32)
    gamma = jnp.ones((d_in,), dtype=jnp.float32)   # PyTorch default init
    beta = jnp.zeros((d_in,), dtype=jnp.float32)
    out = jax.block_until_ready(batchnorm1d(x, gamma, beta))
    ref = _reference(x, gamma, beta)
    assert out.shape == ref.shape
    assert jnp.allclose(out, ref, atol=1e-4, rtol=1e-4), "mismatch (single input)"

    # Case 2: list input -> sum fused inside the kernel.
    x2 = jax.random.normal(k2, (batch, d_in), dtype=jnp.float32)
    out_list = jax.block_until_ready(batchnorm1d([x, x2], gamma, beta))
    ref_list = _reference([x, x2], gamma, beta)
    assert jnp.allclose(out_list, ref_list, atol=1e-4, rtol=1e-4), \
        "mismatch (list input)"

    # Case 3: lane-dense C (multiple of 128); the >=2-blocks rule gives a
    # 2-wide feature grid (exercises the pipelined / megacore path).
    batch3, d_in3 = 16, 256
    x3 = jax.random.normal(k3, (batch3, d_in3), dtype=jnp.float32)
    gamma3 = jnp.ones((d_in3,), dtype=jnp.float32)
    beta3 = jnp.zeros((d_in3,), dtype=jnp.float32)
    out3 = jax.block_until_ready(batchnorm1d(x3, gamma3, beta3))
    ref3 = _reference(x3, gamma3, beta3)
    assert jnp.allclose(out3, ref3, atol=1e-4, rtol=1e-4), "mismatch (tiled C)"

    # Case 4: force the two-pass large-N fallback at a small shape (batch not
    # a multiple of the batch tile -> exercises zero-row padding too).
    batch4, d_in4 = 130, 256
    x4 = jax.random.normal(k4, (batch4, d_in4), dtype=jnp.float32)
    gamma4 = jnp.ones((d_in4,), dtype=jnp.float32)
    beta4 = jnp.zeros((d_in4,), dtype=jnp.float32)
    out4 = jax.block_until_ready(
        batchnorm1d(x4, gamma4, beta4, force_two_pass=True,
                    max_tile_n=64, max_tile_c=128))
    ref4 = _reference(x4, gamma4, beta4)
    assert jnp.allclose(out4, ref4, atol=1e-4, rtol=1e-4), "mismatch (two-pass)"

    print("KERNEL_OK")
</pallas_src>

<mosaic_0001>
module attributes {stable_mosaic.version = 11 : i64} {
  func.func @kernel(%arg0: i32, %arg1: memref<8x128xf32, #tpu.memory_space<vmem>>, %arg2: memref<1x128xf32, #tpu.memory_space<vmem>>, %arg3: memref<1x128xf32, #tpu.memory_space<vmem>>, %arg4: memref<8x128xf32, #tpu.memory_space<vmem>>) attributes {dimension_semantics = [#tpu.dimension_semantics<parallel>], iteration_bounds = array<i64: 1>, scalar_prefetch = 0 : i64, scratch_operands = 0 : i64, tpu.core_type = #tpu.core_type<tc>, window_params = [{transform_indices = @transform_0, window_bounds = array<i64: 8, 128>}, {transform_indices = @transform_1, window_bounds = array<i64: 1, 128>}, {transform_indices = @transform_2, window_bounds = array<i64: 1, 128>}, {transform_indices = @transform_3, window_bounds = array<i64: 8, 128>}]} {
    %c0 = arith.constant 0 : index
    %c0_0 = arith.constant 0 : index
    %0 = vector.load %arg1[%c0, %c0_0] : memref<8x128xf32, #tpu.memory_space<vmem>>, vector<8x128xf32>
    %cst = arith.constant dense<0.000000e+00> : vector<128xf32>
    %1 = vector.multi_reduction <add>, %0, %cst [0] : vector<8x128xf32> to vector<128xf32>
    %2 = vector.shape_cast %1 : vector<128xf32> to vector<1x128xf32>
    %3 = arith.mulf %0, %0 : vector<8x128xf32>
    %cst_1 = arith.constant dense<0.000000e+00> : vector<128xf32>
    %4 = vector.multi_reduction <add>, %3, %cst_1 [0] : vector<8x128xf32> to vector<128xf32>
    %5 = vector.shape_cast %4 : vector<128xf32> to vector<1x128xf32>
    %cst_2 = arith.constant 1.250000e-01 : f32
    %6 = vector.broadcast %cst_2 : f32 to vector<1x128xf32>
    %7 = arith.mulf %2, %6 : vector<1x128xf32>
    %cst_3 = arith.constant 1.250000e-01 : f32
    %8 = vector.broadcast %cst_3 : f32 to vector<1x128xf32>
    %9 = arith.mulf %5, %8 : vector<1x128xf32>
    %10 = arith.mulf %7, %7 : vector<1x128xf32>
    %11 = arith.subf %9, %10 : vector<1x128xf32>
    %cst_4 = arith.constant 0.000000e+00 : f32
    %12 = vector.broadcast %cst_4 : f32 to vector<1x128xf32>
    %13 = arith.maximumf %11, %12 : vector<1x128xf32>
    %cst_5 = arith.constant 9.99999974E-6 : f32
    %14 = vector.broadcast %cst_5 : f32 to vector<1x128xf32>
    %15 = arith.addf %13, %14 : vector<1x128xf32>
    %16 = math.rsqrt %15 : vector<1x128xf32>
    %c0_6 = arith.constant 0 : index
    %c0_7 = arith.constant 0 : index
    %17 = vector.load %arg2[%c0_6, %c0_7] : memref<1x128xf32, #tpu.memory_space<vmem>>, vector<1x128xf32>
    %18 = arith.mulf %17, %16 : vector<1x128xf32>
    %c0_8 = arith.constant 0 : index
    %c0_9 = arith.constant 0 : index
    %19 = vector.load %arg3[%c0_8, %c0_9] : memref<1x128xf32, #tpu.memory_space<vmem>>, vector<1x128xf32>
    %20 = arith.mulf %7, %18 : vector<1x128xf32>
    %21 = arith.subf %19, %20 : vector<1x128xf32>
    %22 = vector.broadcast %18 : vector<1x128xf32> to vector<8x128xf32>
    %23 = arith.mulf %0, %22 : vector<8x128xf32>
    %24 = vector.broadcast %21 : vector<1x128xf32> to vector<8x128xf32>
    %25 = arith.addf %23, %24 : vector<8x128xf32>
    %c0_10 = arith.constant 0 : index
    %c0_11 = arith.constant 0 : index
    %26 = vector.load %arg4[%c0_10, %c0_11] : memref<8x128xf32, #tpu.memory_space<vmem>>, vector<8x128xf32>
    tpu.vector_store %arg4[%c0_10, %c0_11], %25 {strides = array<i32>} : memref<8x128xf32, #tpu.memory_space<vmem>>, vector<8x128xf32>,
    return
  }
  func.func @transform_0(%arg0: i32) -> (i32, i32) {
    %c0_i32 = arith.constant 0 : i32
    %c0_i32_0 = arith.constant 0 : i32
    return %c0_i32, %arg0 : i32, i32
  }
  func.func @transform_1(%arg0: i32) -> (i32, i32) {
    %c0_i32 = arith.constant 0 : i32
    %c0_i32_0 = arith.constant 0 : i32
    return %c0_i32, %arg0 : i32, i32
  }
  func.func @transform_2(%arg0: i32) -> (i32, i32) {
    %c0_i32 = arith.constant 0 : i32
    %c0_i32_0 = arith.constant 0 : i32
    return %c0_i32, %arg0 : i32, i32
  }
  func.func @transform_3(%arg0: i32) -> (i32, i32) {
    %c0_i32 = arith.constant 0 : i32
    %c0_i32_0 = arith.constant 0 : i32
    return %c0_i32, %arg0 : i32, i32
  }
}

</mosaic_0001>

<bundles_post_ra>
// kernel: tpu_custom_call.1
= control target key start
LH: loop header
LB: loop body
LE: loop exit
PB: predicated region body
PF: predicated region fallthrough
CT: control target
= control target key end

     0   :  { %8 = vsyncpa [#allocation3], 0  ;;  %s187_s0 = inlined_call_operand.hbm [shape: f32[8,128], index: 0, kind: input, shape index: {}]   ;;  %s188_s1 = inlined_call_operand.vmem [shape: f32[1,128], index: 1, kind: input, shape index: {}]   ;;  %s189_s2 = inlined_call_operand.vmem [shape: f32[1,128], index: 2, kind: input, shape index: {}]   ;;  %s190_s3 = inlined_call_operand.hbm [shape: f32[8,128], index: 3, kind: output, shape index: {}]  }
   0x1   :  { %9 = vsyncpa [#allocation4], 0  ;;  %s135_s12 = smov [#allocation2]   ;;  %s87_s16 = scalar_lea.hbm %s187_s0, 128 }
   0x2   :  { %s16_s13 = sshll.u32 %s135_s12, 4  ;;  %p88_p0 = scmp.ne.s32.totalorder %s187_s0, %s87_s16  ;;  %s17_s13 = int_to_ptr.vmem [resolvable:$true] %s16_s13 }
   0x3   :  { %p91_p1 = scmp.lt.u32.totalorder %s87_s16, %s187_s0 }
   0x5   :  { %p93_p2 = pnand %p91_p1, %p88_p0 }
   0x7   :  { %96 = shalt.err (!%p93_p2)
}
   0x8   :  { %s97_s21 = scalar_lea.vmem %s17_s13, 128  ;;  %p102_p4 = scmp.lt.s32.totalorder %s17_s13, %s17_s13 }
   0x9   :  { %p98_p3 = scmp.ne.s32.totalorder %s17_s13, %s97_s21  ;;  %p103_p5 = scmp.lt.s32.totalorder %s97_s21, %s97_s21 }
   0xb   :  { %p104_p6 = por %p103_p5, %p102_p4 }
   0xd   :  { %p105_p7 = pnand %p104_p6, %p98_p3 }
   0xf   :  { %108 = shalt.err (!%p105_p7)
}
  0x10   :  { %19 = dma.hbm_to_vmem [thread:$0]  %s187_s0, 128, %s17_s13, [#allocation3]  }
  0x11   :  { %131 = dma.done.wait [#allocation3], 128  }
  0x12   :  { %132 = vsyncadd [#allocation3], 4294967168  ;;  %v27_v0 = vld [vmem:[#allocation2] sm:$0xff]  ;;  %v54_v20 = vlaneseq  ;;  %s136_s27 = smov [#allocation5]  }
  0x13   :  { %v28_v1 = vrot.slane %v27_v0, 4  ;;  %v34_v2 = vmul.f32 %v27_v0, %v27_v0  ;;  %v48_v22 = vld [vmem:[%s188_s1] sm:$0x1]  ;;  %s74_s28 = sshll.u32 %s136_s27, 4  ;;  %s75_s28 = int_to_ptr.vmem [resolvable:$true] %s74_s28 }
  0x14   :  { %v55_v21 = vshrl.u32 %v54_v20, 7  ;;  %v50_v26 = vld [vmem:[%s189_s2] sm:$0x1]  ;;  %s109_s29 = scalar_lea.vmem %s75_s28, 128  ;;  %p114_p9 = scmp.lt.s32.totalorder %s75_s28, %s75_s28 }
  0x15   :  { %v29_v3 = vadd.f32 %v28_v1, %v27_v0  ;;  %v35_v4 = vrot.slane %v34_v2, 4  ;;  %p110_p8 = scmp.ne.s32.totalorder %s75_s28, %s109_s29  ;;  %p115_p10 = scmp.lt.s32.totalorder %s109_s29, %s109_s29 }
  0x16   :  { %v56_v23 = vsub.s32 0, %v55_v21 }
  0x17   :  { %v30_v5 = vrot.slane %v29_v3, 2  ;;  %v36_v6 = vadd.f32 %v35_v4, %v34_v2  ;;  %p116_p11 = por %p115_p10, %p114_p9 }
  0x19   :  { %v31_v7 = vadd.f32 %v30_v5, %v29_v3  ;;  %v37_v8 = vrot.slane %v36_v6, 2  ;;  %p117_p12 = pnand %p116_p11, %p110_p8 }
  0x1b   :  { %v32_v9 = vrot.slane %v31_v7, 1  ;;  %v38_v10 = vadd.f32 %v37_v8, %v36_v6 }
  0x1d   :  { %v33_v11 = vadd.f32 %v32_v9, %v31_v7  ;;  %v39_v12 = vrot.slane %v38_v10, 1 }
  0x1f   :  { %v40_v13 = vadd.f32 %v39_v12, %v38_v10  ;;  %v41_v14 = vmul.f32 0.125, %v33_v11 }
  0x21   :  { %v42_v15 = vmul.f32 0.125, %v40_v13  ;;  %v43_v16 = vmul.f32 %v41_v14, %v41_v14 }
  0x23   :  { %v44_v17 = vsub.f32 %v42_v15, %v43_v16 }
  0x25   :  { %v45_v18 = vmax.f32 %v44_v17, 0.0 }
  0x27   :  { %v46_v19 = vadd.f32 1e-05, %v45_v18 }
  0x29   :  { %85 = vrsqrt.f32 %v46_v19 }
  0x33   :  { %v86_v24 = vpop.eup %85 }
  0x34   :  { %v49_v25 = vmul.f32 %v86_v24, %v48_v22 }
  0x36   :  { %v51_v27 = vmul.f32 %v49_v25, %v41_v14  ;;  %v57_v28 = vrot.slane %v49_v25, %v56_v23 }
  0x38   :  { %v52_v29 = vsub.f32 %v50_v26, %v51_v27  ;;  %v59_v30 = vmul.f32 %v57_v28, %v27_v0 }
  0x3a   :  { %v64_v31 = vrot.slane %v52_v29, %v56_v23 }
  0x3c   :  { %v66_v32 = vadd.f32 %v64_v31, %v59_v30 }
  0x3e   :  { %67 = vst [vmem:[#allocation5] sm:$0xff] %v66_v32 }
  0x3f   :  { %120 = shalt.err (!%p117_p12)
}
  0x40   :  { %s121_s2 = scalar_lea.hbm %s190_s3, 128 }
  0x41   :  { %p122_p13 = scmp.ne.s32.totalorder %s190_s3, %s121_s2  ;;  %p125_p0 = scmp.lt.u32.totalorder %s121_s2, %s190_s3 }
  0x43   :  { %p127_p1 = pnand %p125_p0, %p122_p13 }
  0x45   :  { %130 = shalt.err (!%p127_p1)
}
  0x46   :  { %77 = dma.vmem_to_hbm [thread:$0]  %s75_s28, 128, %s190_s3, [#allocation4]  }
  0x47   :  { %133 = dma.done.wait [#allocation4], 128  }
  0x48   :  { %134 = vsyncadd [#allocation4], 4294967168 }
  0x49   :  { %81 = vsyncpa [#allocation3], 1 }
  0x4a   :  { %82 = vsyncpa [#allocation4], 1 }

</bundles_post_ra>
